<compile_context>
chip_gen: v6e
topology: v6e:2x2x1
jax: 0.10.0
libtpu: 0.0.40
codegen_flags: <defaults>
</compile_context>

<pallas_src>
import jax
import jax.numpy as jnp
from jax import lax
from jax.experimental import pallas as pl
from jax.experimental.pallas import tpu as pltpu


def _pick_m_tile(m):
    """Largest divisor of m that is a multiple of 8 and <= 256, else the full m."""
    for tm in (256, 128, 64, 32, 16, 8):
        if m % tm == 0:
            return tm
    return m


def _convfuser_kernel(x0_ref, x1_ref, x2_ref, w_ref, shift_ref, o_ref, acc_ref):
    """One (batch n, depth slice d, spatial tile m) output block.

    x*_ref   : (1, 1, TM, 9*Cin2)  im2col'd activations at depth offsets d+0 / d+1 / d+2
    w_ref    : (3, 9*Cin2, Coutp)  BN-scale-folded conv weights, kd-major
    shift_ref: (1, Coutp) f32      folded BatchNorm shift (beta - mean * scale)
    o_ref    : (1, 1, TM, Coutp)   f32 output block (lane-dense Coutp)
    acc_ref  : VMEM (TM, Coutp) f32 scratch accumulator
    """
    acc_ref[...] = jnp.dot(x0_ref[0, 0], w_ref[0],
                           preferred_element_type=jnp.float32)
    acc_ref[...] += jnp.dot(x1_ref[0, 0], w_ref[1],
                            preferred_element_type=jnp.float32)
    acc_ref[...] += jnp.dot(x2_ref[0, 0], w_ref[2],
                            preferred_element_type=jnp.float32)
    # fused inference BatchNorm shift + ReLU epilogue (scale already folded into weights)
    o_ref[0, 0] = jnp.maximum(acc_ref[...] + shift_ref[0], 0.0).astype(o_ref.dtype)


def conv_fuser_forward(img_voxel_feats, pts_voxel_feats, params, *,
                       compute_dtype=jnp.bfloat16):
    """img/pts_voxel_feats: (N, Cin, D, H, W) float32 (PyTorch NCDHW convention)."""
    w = params["conv_weight"]          # (Cout, 2*Cin, 3, 3, 3)  -- PyTorch OIDHW layout
    gamma = params["bn_gamma"]
    beta = params["bn_beta"]
    mean = params["bn_mean"]
    var = params["bn_var"]
    eps = params["bn_eps"]

    N, Cin, D, H, W = img_voxel_feats.shape
    Cout = w.shape[0]
    Cin2 = 2 * Cin
    K9 = 9 * Cin2
    M = H * W
    TM = _pick_m_tile(M)
    Coutp = ((Cout + 127) // 128) * 128          # lane-dense output channels

    # ---- channels-last + spatial zero pad (plain JAX / XLA) ---------------------------
    x = jnp.concatenate([img_voxel_feats, pts_voxel_feats], axis=1)   # (N, Cin2, D, H, W)
    x = jnp.transpose(x, (0, 2, 3, 4, 1))                             # (N, D, H, W, Cin2)
    x = jnp.pad(x, ((0, 0), (1, 1), (1, 1), (1, 1), (0, 0)))          # (N, D+2, H+2, W+2, Cin2)

    # ---- im2col over the (kh, kw) taps: contraction dim becomes 9*Cin2 ----------------
    taps = [x[:, :, kh:kh + H, kw:kw + W, :] for kh in range(3) for kw in range(3)]
    x9 = jnp.concatenate(taps, axis=-1)                               # (N, D+2, H, W, 9*Cin2)
    x9 = x9.reshape(N, D + 2, M, K9).astype(compute_dtype)

    # ---- fold BatchNorm scale into the conv weights; keep only the shift --------------
    scale = gamma / jnp.sqrt(var + eps)                               # (Cout,)
    shift = (beta - mean * scale).astype(jnp.float32)                 # (Cout,)
    w_s = w.astype(jnp.float32) * scale[:, None, None, None, None]    # (Cout, Cin2, 3, 3, 3)
    w_t = jnp.transpose(w_s, (2, 3, 4, 1, 0))                         # (kd, kh, kw, Cin2, Cout)
    w9 = w_t.reshape(3, K9, Cout)                                     # K ordered as (kh, kw, c)
    w9 = jnp.pad(w9, ((0, 0), (0, 0), (0, Coutp - Cout))).astype(compute_dtype)
    shift_p = jnp.pad(shift, (0, Coutp - Cout)).reshape(1, Coutp)

    grid = (N, D, M // TM)

    def x_map(kd):
        return lambda n, d, m, kd=kd: (n, d + kd, m, 0)

    in_specs = [
        pl.BlockSpec((1, 1, TM, K9), x_map(0)),
        pl.BlockSpec((1, 1, TM, K9), x_map(1)),
        pl.BlockSpec((1, 1, TM, K9), x_map(2)),
        pl.BlockSpec((3, K9, Coutp), lambda n, d, m: (0, 0, 0)),
        pl.BlockSpec((1, Coutp), lambda n, d, m: (0, 0)),
    ]
    out_spec = pl.BlockSpec((1, 1, TM, Coutp), lambda n, d, m: (n, d, m, 0))

    flops = 2 * N * D * M * (27 * Cin2) * Cout
    bytes_accessed = (3 * x9.size * x9.dtype.itemsize
                      + w9.size * w9.dtype.itemsize
                      + N * D * M * Coutp * 4)

    out = pl.pallas_call(
        _convfuser_kernel,
        out_shape=jax.ShapeDtypeStruct((N, D, M, Coutp), jnp.float32),
        grid_spec=pltpu.PrefetchScalarGridSpec(
            num_scalar_prefetch=0,
            grid=grid,
            in_specs=in_specs,
            out_specs=out_spec,
            scratch_shapes=[pltpu.VMEM((TM, Coutp), jnp.float32)],
        ),
        compiler_params=pltpu.CompilerParams(
            dimension_semantics=("parallel", "parallel", "parallel")),
        cost_estimate=pl.CostEstimate(flops=flops, transcendentals=0,
                                      bytes_accessed=bytes_accessed),
    )(x9, x9, x9, w9, shift_p)

    out = out[..., :Cout].reshape(N, D, H, W, Cout)
    return jnp.transpose(out, (0, 4, 1, 2, 3))        # back to PyTorch NCDHW


def _reference_forward(img, pts, params):
    """Pure-JAX reference (lax conv) for the correctness check."""
    x = jnp.concatenate([img, pts], axis=1)  # NCDHW
    y = lax.conv_general_dilated(
        x, params["conv_weight"],
        window_strides=(1, 1, 1), padding=((1, 1), (1, 1), (1, 1)),
        dimension_numbers=("NCDHW", "OIDHW", "NCDHW"),
        precision=lax.Precision.HIGHEST)
    scale = params["bn_gamma"] / jnp.sqrt(params["bn_var"] + params["bn_eps"])
    shift = params["bn_beta"] - params["bn_mean"] * scale
    y = y * scale[None, :, None, None, None] + shift[None, :, None, None, None]
    return jnp.maximum(y, 0.0)


if __name__ == "__main__":
    # small synthetic shapes consistent with the module
    N, Cin, Cout = 2, 8, 16
    D = H = W = 8

    key = jax.random.PRNGKey(0)
    k_img, k_pts, k_w, k_g, k_b, k_m, k_v = jax.random.split(key, 7)

    img_voxel_feats = jax.random.normal(k_img, (N, Cin, D, H, W), jnp.float32)
    pts_voxel_feats = jax.random.normal(k_pts, (N, Cin, D, H, W), jnp.float32)

    params = {
        "conv_weight": jax.random.normal(k_w, (Cout, 2 * Cin, 3, 3, 3), jnp.float32) * 0.05,
        "bn_gamma": 1.0 + 0.1 * jax.random.normal(k_g, (Cout,), jnp.float32),
        "bn_beta": 0.1 * jax.random.normal(k_b, (Cout,), jnp.float32),
        "bn_mean": 0.1 * jax.random.normal(k_m, (Cout,), jnp.float32),
        "bn_var": jnp.abs(jax.random.normal(k_v, (Cout,), jnp.float32)) + 0.5,
        "bn_eps": 1e-5,
    }

    # bf16 compute path (recommended on v6e/v7x) and f32 compute path
    out_bf16 = conv_fuser_forward(img_voxel_feats, pts_voxel_feats, params)
    out_f32 = conv_fuser_forward(img_voxel_feats, pts_voxel_feats, params,
                                 compute_dtype=jnp.float32)
    out_bf16, out_f32 = jax.block_until_ready((out_bf16, out_f32))

    ref = _reference_forward(img_voxel_feats, pts_voxel_feats, params)

    assert out_bf16.shape == (N, Cout, D, H, W)
    assert out_f32.shape == (N, Cout, D, H, W)
    assert jnp.allclose(out_f32, ref, atol=2e-2, rtol=2e-2)
    # bf16 activations/weights with f32 accumulation -> slightly looser tolerance
    assert jnp.allclose(out_bf16, ref, atol=6e-2, rtol=6e-2)

    print("KERNEL_OK")
</pallas_src>

<mosaic_0001>
module attributes {stable_mosaic.version = 11 : i64} {
  func.func @_convfuser_kernel(%arg0: i32, %arg1: i32, %arg2: i32, %arg3: memref<1x1x64x144xbf16, #tpu.memory_space<vmem>>, %arg4: memref<1x1x64x144xbf16, #tpu.memory_space<vmem>>, %arg5: memref<1x1x64x144xbf16, #tpu.memory_space<vmem>>, %arg6: memref<3x144x128xbf16, #tpu.memory_space<vmem>>, %arg7: memref<1x128xf32, #tpu.memory_space<vmem>>, %arg8: memref<1x1x64x128xf32, #tpu.memory_space<vmem>>, %arg9: memref<64x128xf32, #tpu.memory_space<vmem>>) attributes {dimension_semantics = [#tpu.dimension_semantics<parallel>, #tpu.dimension_semantics<parallel>, #tpu.dimension_semantics<parallel>], iteration_bounds = array<i64: 2, 8, 1>, scalar_prefetch = 0 : i64, scratch_operands = 1 : i64, tpu.core_type = #tpu.core_type<tc>, window_params = [{transform_indices = @transform_0, window_bounds = array<i64: 1, 1, 64, 144>}, {transform_indices = @transform_1, window_bounds = array<i64: 1, 1, 64, 144>}, {transform_indices = @transform_2, window_bounds = array<i64: 1, 1, 64, 144>}, {pipeline_mode = #tpu.pipeline_mode<synchronous>, transform_indices = @transform_3, window_bounds = array<i64: 3, 144, 128>}, {pipeline_mode = #tpu.pipeline_mode<synchronous>, transform_indices = @transform_4, window_bounds = array<i64: 1, 128>}, {transform_indices = @transform_5, window_bounds = array<i64: 1, 1, 64, 128>}]} {
    %c0 = arith.constant 0 : index
    %c0_0 = arith.constant 0 : index
    %c0_1 = arith.constant 0 : index
    %c0_2 = arith.constant 0 : index
    %0 = vector.load %arg3[%c0, %c0_0, %c0_1, %c0_2] : memref<1x1x64x144xbf16, #tpu.memory_space<vmem>>, vector<1x1x64x144xbf16>
    %1 = vector.shape_cast %0 : vector<1x1x64x144xbf16> to vector<64x144xbf16>
    %c0_3 = arith.constant 0 : index
    %c0_4 = arith.constant 0 : index
    %c0_5 = arith.constant 0 : index
    %2 = vector.load %arg6[%c0_3, %c0_4, %c0_5] : memref<3x144x128xbf16, #tpu.memory_space<vmem>>, vector<1x144x128xbf16>
    %3 = vector.shape_cast %2 : vector<1x144x128xbf16> to vector<144x128xbf16>
    %cst = arith.constant dense<0.000000e+00> : vector<64x128xf32>
    %4 = tpu.matmul %1, %3, %cst {dimension_numbers = #tpu.dot_dimension_numbers<[1], [0], [0], [1], [0, 0, 1, 1], [], []>} : vector<64x144xbf16>, vector<144x128xbf16>, vector<64x128xf32> -> vector<64x128xf32>
    %c0_6 = arith.constant 0 : index
    %c0_7 = arith.constant 0 : index
    %5 = vector.load %arg9[%c0_6, %c0_7] : memref<64x128xf32, #tpu.memory_space<vmem>>, vector<64x128xf32>
    tpu.vector_store %arg9[%c0_6, %c0_7], %4 {strides = array<i32>} : memref<64x128xf32, #tpu.memory_space<vmem>>, vector<64x128xf32>,
    %c0_8 = arith.constant 0 : index
    %c0_9 = arith.constant 0 : index
    %6 = vector.load %arg9[%c0_8, %c0_9] : memref<64x128xf32, #tpu.memory_space<vmem>>, vector<64x128xf32>
    %c0_10 = arith.constant 0 : index
    %c0_11 = arith.constant 0 : index
    %c0_12 = arith.constant 0 : index
    %c0_13 = arith.constant 0 : index
    %7 = vector.load %arg4[%c0_10, %c0_11, %c0_12, %c0_13] : memref<1x1x64x144xbf16, #tpu.memory_space<vmem>>, vector<1x1x64x144xbf16>
    %8 = vector.shape_cast %7 : vector<1x1x64x144xbf16> to vector<64x144xbf16>
    %c1 = arith.constant 1 : index
    %c0_14 = arith.constant 0 : index
    %c0_15 = arith.constant 0 : index
    %9 = vector.load %arg6[%c1, %c0_14, %c0_15] : memref<3x144x128xbf16, #tpu.memory_space<vmem>>, vector<1x144x128xbf16>
    %10 = vector.shape_cast %9 : vector<1x144x128xbf16> to vector<144x128xbf16>
    %cst_16 = arith.constant dense<0.000000e+00> : vector<64x128xf32>
    %11 = tpu.matmul %8, %10, %cst_16 {dimension_numbers = #tpu.dot_dimension_numbers<[1], [0], [0], [1], [0, 0, 1, 1], [], []>} : vector<64x144xbf16>, vector<144x128xbf16>, vector<64x128xf32> -> vector<64x128xf32>
    %12 = arith.addf %6, %11 : vector<64x128xf32>
    %c0_17 = arith.constant 0 : index
    %c0_18 = arith.constant 0 : index
    %13 = vector.load %arg9[%c0_17, %c0_18] : memref<64x128xf32, #tpu.memory_space<vmem>>, vector<64x128xf32>
    tpu.vector_store %arg9[%c0_17, %c0_18], %12 {strides = array<i32>} : memref<64x128xf32, #tpu.memory_space<vmem>>, vector<64x128xf32>,
    %c0_19 = arith.constant 0 : index
    %c0_20 = arith.constant 0 : index
    %14 = vector.load %arg9[%c0_19, %c0_20] : memref<64x128xf32, #tpu.memory_space<vmem>>, vector<64x128xf32>
    %c0_21 = arith.constant 0 : index
    %c0_22 = arith.constant 0 : index
    %c0_23 = arith.constant 0 : index
    %c0_24 = arith.constant 0 : index
    %15 = vector.load %arg5[%c0_21, %c0_22, %c0_23, %c0_24] : memref<1x1x64x144xbf16, #tpu.memory_space<vmem>>, vector<1x1x64x144xbf16>
    %16 = vector.shape_cast %15 : vector<1x1x64x144xbf16> to vector<64x144xbf16>
    %c2 = arith.constant 2 : index
    %c0_25 = arith.constant 0 : index
    %c0_26 = arith.constant 0 : index
    %17 = vector.load %arg6[%c2, %c0_25, %c0_26] : memref<3x144x128xbf16, #tpu.memory_space<vmem>>, vector<1x144x128xbf16>
    %18 = vector.shape_cast %17 : vector<1x144x128xbf16> to vector<144x128xbf16>
    %cst_27 = arith.constant dense<0.000000e+00> : vector<64x128xf32>
    %19 = tpu.matmul %16, %18, %cst_27 {dimension_numbers = #tpu.dot_dimension_numbers<[1], [0], [0], [1], [0, 0, 1, 1], [], []>} : vector<64x144xbf16>, vector<144x128xbf16>, vector<64x128xf32> -> vector<64x128xf32>
    %20 = arith.addf %14, %19 : vector<64x128xf32>
    %c0_28 = arith.constant 0 : index
    %c0_29 = arith.constant 0 : index
    %21 = vector.load %arg9[%c0_28, %c0_29] : memref<64x128xf32, #tpu.memory_space<vmem>>, vector<64x128xf32>
    tpu.vector_store %arg9[%c0_28, %c0_29], %20 {strides = array<i32>} : memref<64x128xf32, #tpu.memory_space<vmem>>, vector<64x128xf32>,
    %c0_30 = arith.constant 0 : index
    %c0_31 = arith.constant 0 : index
    %22 = vector.load %arg9[%c0_30, %c0_31] : memref<64x128xf32, #tpu.memory_space<vmem>>, vector<64x128xf32>
    %c0_32 = arith.constant 0 : index
    %c0_33 = arith.constant 0 : index
    %23 = vector.load %arg7[%c0_32, %c0_33] : memref<1x128xf32, #tpu.memory_space<vmem>>, vector<1x128xf32>
    %24 = vector.shape_cast %23 : vector<1x128xf32> to vector<128xf32>
    %25 = vector.shape_cast %24 : vector<128xf32> to vector<1x128xf32>
    %26 = vector.broadcast %25 : vector<1x128xf32> to vector<64x128xf32>
    %27 = arith.addf %22, %26 : vector<64x128xf32>
    %cst_34 = arith.constant 0.000000e+00 : f32
    %28 = vector.broadcast %cst_34 : f32 to vector<64x128xf32>
    %29 = arith.maximumf %27, %28 : vector<64x128xf32>
    %c0_35 = arith.constant 0 : index
    %c0_36 = arith.constant 0 : index
    %c0_37 = arith.constant 0 : index
    %c0_38 = arith.constant 0 : index
    %30 = vector.load %arg8[%c0_35, %c0_36, %c0_37, %c0_38] : memref<1x1x64x128xf32, #tpu.memory_space<vmem>>, vector<1x1x64x128xf32>
    %31 = vector.shape_cast %30 : vector<1x1x64x128xf32> to vector<64x128xf32>
    %32 = vector.shape_cast %29 : vector<64x128xf32> to vector<1x1x64x128xf32>
    tpu.vector_store %arg8[%c0_35, %c0_36, %c0_37, %c0_38], %32 {strides = array<i32>} : memref<1x1x64x128xf32, #tpu.memory_space<vmem>>, vector<1x1x64x128xf32>,
    return
  }
  func.func @transform_0(%arg0: i32, %arg1: i32, %arg2: i32) -> (i32, i32, i32, i32) {
    %c0_i32 = arith.constant 0 : i32
    %0 = arith.addi %arg1, %c0_i32 : i32
    %c0_i32_0 = arith.constant 0 : i32
    %c0_i32_1 = arith.constant 0 : i32
    return %arg0, %0, %arg2, %c0_i32_0 : i32, i32, i32, i32
  }
  func.func @transform_1(%arg0: i32, %arg1: i32, %arg2: i32) -> (i32, i32, i32, i32) {
    %c1_i32 = arith.constant 1 : i32
    %0 = arith.addi %arg1, %c1_i32 : i32
    %c0_i32 = arith.constant 0 : i32
    %c0_i32_0 = arith.constant 0 : i32
    return %arg0, %0, %arg2, %c0_i32 : i32, i32, i32, i32
  }
  func.func @transform_2(%arg0: i32, %arg1: i32, %arg2: i32) -> (i32, i32, i32, i32) {
    %c2_i32 = arith.constant 2 : i32
    %0 = arith.addi %arg1, %c2_i32 : i32
    %c0_i32 = arith.constant 0 : i32
    %c0_i32_0 = arith.constant 0 : i32
    return %arg0, %0, %arg2, %c0_i32 : i32, i32, i32, i32
  }
  func.func @transform_3(%arg0: i32, %arg1: i32, %arg2: i32) -> (i32, i32, i32) {
    %c0_i32 = arith.constant 0 : i32
    %c0_i32_0 = arith.constant 0 : i32
    %c0_i32_1 = arith.constant 0 : i32
    %c0_i32_2 = arith.constant 0 : i32
    return %c0_i32, %c0_i32_0, %c0_i32_1 : i32, i32, i32
  }
  func.func @transform_4(%arg0: i32, %arg1: i32, %arg2: i32) -> (i32, i32) {
    %c0_i32 = arith.constant 0 : i32
    %c0_i32_0 = arith.constant 0 : i32
    %c0_i32_1 = arith.constant 0 : i32
    return %c0_i32, %c0_i32_0 : i32, i32
  }
  func.func @transform_5(%arg0: i32, %arg1: i32, %arg2: i32) -> (i32, i32, i32, i32) {
    %c0_i32 = arith.constant 0 : i32
    %c0_i32_0 = arith.constant 0 : i32
    return %arg0, %arg1, %arg2, %c0_i32 : i32, i32, i32, i32
  }
}

</mosaic_0001>

<bundles_post_ra>
// kernel: tpu_custom_call.1
= control target key start
LH: loop header
LB: loop body
LE: loop exit
PB: predicated region body
PF: predicated region fallthrough
CT: control target
= control target key end

     0   :  { %s2345_s0 = inlined_call_operand.hbm [shape: bf16[2,10,64,144], index: 0, kind: input, shape index: {}]   ;;  %s2346_s1 = inlined_call_operand.hbm [shape: bf16[2,10,64,144], index: 1, kind: input, shape index: {}]   ;;  %s2347_s2 = inlined_call_operand.hbm [shape: bf16[2,10,64,144], index: 2, kind: input, shape index: {}]   ;;  %s2348_s3 = inlined_call_operand.hbm [shape: bf16[3,144,128], index: 3, kind: input, shape index: {}]   ;;  %s2349_s4 = inlined_call_operand.vmem [shape: f32[1,128], index: 4, kind: input, shape index: {}]   ;;  %s2350_s5 = inlined_call_operand.hbm [shape: f32[2,8,64,128], index: 5, kind: output, shape index: {}]  }
   0x1   :  { %2365 = sst [smem:[#allocation27_spill]] %s2345_s0 }
   0x2   :  { %2366 = sst [smem:[#allocation28_spill]] %s2346_s1 }
   0x3   :  { %2367 = sst [smem:[#allocation29_spill]] %s2347_s2 }
   0x4   :  { %2368 = sst [smem:[#allocation30_spill]] %s2348_s3 }
   0x5   :  { %2369 = sst [smem:[#allocation31_spill]] %s2349_s4 }
   0x6   :  { %2370 = sst [smem:[#allocation32_spill]] %s2350_s5 }
   0x7   :  { %10 = vsyncpa [#allocation4], 0 }
   0x8   :  { %12 = vsyncpa [#allocation4 + $0x1], 0 }
   0x9   :  { %13 = vsyncpa [#allocation7], 0 }
   0xa   :  { %15 = vsyncpa [#allocation7 + $0x1], 0 }
   0xb   :  { %16 = vsyncpa [#allocation10], 0 }
   0xc   :  { %17 = vsyncpa [#allocation5], 0 }
   0xd   :  { %19 = vsyncpa [#allocation5 + $0x1], 0  ;;  %s1893_s18 = smov 0   ;;  %s1895_s19 = smov 0  }
   0xe   :  { %s1897_s20 = smov 0   ;;  %s1899_s21 = smov 0  }
   0xf   :  { %s1901_s22 = smov 0   ;;  %s1903_s23 = smov 0  }
  0x10   :  { %s1905_s24 = smov 0   ;;  %s1907_s25 = smov 0  }
  0x11   :  { %s1909_s26 = smov 0   ;;  %s1911_s27 = smov 0  }
  0x12   :  { %s1913_s28 = smov 0   ;;  %s1915_s29 = smov 0  }
  0x13   :  { %s1917_s30 = smov 0   ;;  %s1919_s6 = smov 0  }
  0x14 LB: > { %2371 = sst [smem:[#allocation17_spill]] %s1797_s18  ;;  %s40_s7 = sadd.s32 1, %s1841_s29  ;;  %s1849_s6 = sphi %s1919_s6, %s25_s6   ;;  %s1845_s30 = sphi %s1917_s30, %s2429_s30   ;;  %s1841_s29 = sphi %s1915_s29, %s2419_s29   ;;  %s1837_s28 = sphi %s1913_s28, %s2418_s28   ;;  %s1833_s27 = sphi %s1911_s27, %s2417_s27   ;;  %s1829_s26 = sphi %s1909_s26, %s2416_s26   ;;  %s1825_s25 = sphi %s1907_s25, %s2428_s25   ;;  %s1821_s24 = sphi %s1905_s24, %s2427_s24   ;;  %s1817_s23 = sphi %s1903_s23, %s2426_s23   ;;  %s1813_s22 = sphi %s1901_s22, %s2425_s22   ;;  %s1809_s21 = sphi %s1899_s21, %s2424_s21   ;;  %s1805_s20 = sphi %s1897_s20, %s2423_s20   ;;  %s1801_s19 = sphi %s1895_s19, %s2422_s19   ;;  %s1797_s18 = sphi %s1893_s18, %s2421_s18  }
  0x15   : > { %2372 = sst [smem:[#allocation18_spill]] %s1829_s26  ;;  %s44_s8 = sadd.s32 1, %s1845_s30 }
  0x16   : > { %2373 = sst [smem:[#allocation19_spill]] %s1833_s27  ;;  %p42_p0 = scmp.ge.s32.totalorder %s40_s7, 8 }
  0x17   : > { %2374 = sst [smem:[#allocation20_spill]] %s1837_s28  ;;  %p2355_p1 = scmp.eq.s32.totalorder %s1849_s6, 0 }
  0x18   : > { %2375 = sst [smem:[#allocation21_spill]] %s1841_s29  ;;  %s87_s9 = sadd.s32 1, %s1817_s23 }
  0x19   : > { %2376 = sst [smem:[#allocation22_spill]] %s1845_s30  ;;  %p94_p2 = scmp.ne.s32.totalorder %s1817_s23, %s1813_s22 }
  0x1a   : > { %s1969_s10 = scalar_select %p42_p0, 0, %s40_s7  }
  0x1b   : > { %s2431_s8 = smov (!%p42_p0, %s44_s8), %s1845_s30  ;;  %p1977_p4 = por %p94_p2, %p2355_p1 }
  0x1c   : > { %2377 = sst [smem:[#allocation23_spill]] %s1969_s10  ;;  %s49_s11 = ssub.s32 %s1841_s29, %s1969_s10 }
  0x1d   : > { %s79_s12 = sadd.s32 1, %s1969_s10  ;;  %p46_p3 = scmp.ge.s32.totalorder %s2431_s8, 2 }
  0x1e   : > { %s81_s13 = ssub.s32 %s40_s7, %s79_s12  ;;  %p100_p5 = scmp.ne.s32.totalorder %s1813_s22, %s1809_s21 }
  0x1f   : > { %s2433_s8 = smov (%p46_p3, %s2431_s8), 0  ;;  %s110_s15 = sadd.s32 2, %s1841_s29 }
  0x20   : > { %2379 = sst [smem:[#allocation24_spill]] %s2433_s8  ;;  %s111_s16 = sadd.s32 2, %s1969_s10 }
  0x21   : > { %s48_s17 = ssub.s32 %s1845_s30, %s2433_s8  ;;  %s113_s5 = ssub.s32 %s110_s15, %s111_s16 }
  0x22   : > { %s1989_s28 = sor.u32 %s49_s11, %s48_s17  ;;  %s82_s7 = sor.u32 %s81_s13, %s48_s17 }
  0x23   : > { %p85_p7 = scmp.eq.s32.totalorder %s82_s7, 0  ;;  %s114_s12 = sor.u32 %s113_s5, %s48_s17 }
  0x24   : > { %p1995_p8 = scmp.eq.s32.totalorder %s114_s12, 0  ;;  %p2354_p9 = scmp.lt.s32.totalorder %s1849_s6, 16 }
  0x25   : > { %s1993_s27 = scalar_select %p85_p7, %s1817_s23, %s87_s9  }
  0x26   : > { %s1261_s10 = sshll.u32 %s1841_s29, 4  ;;  %s1363_s2 = smul.u32 160, %s1845_s30 }
  0x27   : > { %2380 = sst [smem:[#allocation25_spill]] %s1993_s27  ;;  %s270_s15 = sand.u32 1, %s1849_s6  }
  0x28   : > { %s257_s8 = sadd.s32 %s1363_s2, %s1261_s10  ;;  %s272_s13 = sand.u32 1, %s1817_s23  }
  0x29   : > { %s2003_s11 = sshll.u32 %s257_s8, 6  ;;  %s2382_s1 = sld [smem:[#allocation28_spill]] }
  0x2a   : > { %s1263_s5 = sshll.u32 %s272_s13, 6  ;;  %p2014_p10 = pnand %p2354_p9, %p1977_p4 }
  0x2b   : > { %s274_s12 = scalar_lea.vmem [#allocation6], %s1263_s5  ;;  %s2018_s8 = scalar_lea.sflag [#allocation7], %s270_s15 }
  0x2c   : > { %s287_s2 = sshll.u32 %s274_s12, 4  ;;  %p1583_p11 = pneg %p2014_p10  ;;  %s288_s2 = int_to_ptr.vmem [resolvable:$true] %s287_s2 }
  0x2d   : > { %s1594_s10 = scalar_lea.vmem %s288_s2, 1024  ;;  %s1851_s18 = smov [#allocation6]  }
  0x2e   : > { %p1595_p12 = scmp.ne.s32.totalorder %s288_s2, %s1594_s10  ;;  %s1599_s13 = sshll.u32 %s1851_s18, 4  ;;  %s1600_s13 = int_to_ptr.vmem [resolvable:$false] %s1599_s13 }
  0x2f   : > { %s1143_s7 = scalar_lea.hbm %s2382_s1, %s2003_s11  ;;  %s1601_s14 = scalar_lea.vmem %s1600_s13, 2048 }
  0x30   : > { %s1144_s9 = scalar_lea.hbm %s1143_s7, 1024  ;;  %p1597_p13 = pnand %p1595_p12, %p1583_p11 }
  0x31   : > { %p1602_p2 = scmp.lt.s32.totalorder %s288_s2, %s1600_s13  ;;  %p1603_p3 = scmp.lt.s32.totalorder %s1601_s14, %s1594_s10 }
  0x32   : > { %p1598_p0 = pneg %p1597_p13 }
  0x33   : > { %p1604_p4 = por %p1603_p3, %p1602_p2 }
  0x35   : > { %p1605_p7 = pnand %p1604_p4, %p1598_p0 }
  0x37   : > { %1608 = shalt.err (!%p1605_p7)
}
  0x38   : > { %s2357_s16 = smov 128   ;;  %s2359_s15 = smov 8  }
  0x39   : > { %1386 = dma.hbm_to_vmem [thread:$0]  (!%p2014_p10), %s1144_s9, 1024, %s288_s2, %s2018_s8, %s2357_s16, %s2357_s16, %s2359_s15  }
  0x3a   : > { %s2029_s7 = sadd.s32 4294967295, %s1849_s6   ;;  %p1257_p13 = scmp.ge.s32.totalorder %s1849_s6, 1 }
  0x3b   : > { %p2363_p11 = scmp.eq.s32.totalorder %s2029_s7, 0  ;;  %p215_p0 = scmp.lt.s32.totalorder %s1849_s6, 17 }
  0x3c   : > { %s1854_s9 = smov [#allocation9]  }
  0x3d   : > { %p2040_p2 = por %p100_p5, %p2363_p11  ;;  %p2044_p3 = pnand %p1257_p13, %p215_p0 }
  0x3e   : > { %s227_s12 = sshll.u32 %s1854_s9, 4  ;;  %s228_s12 = int_to_ptr.vmem [resolvable:$true] %s227_s12 }
  0x3f   : > { %s2384_s5 = scalar_select %p2040_p2, 1, 0 }
  0x40   : > { %p1376_p10 = pneg %p2044_p3  ;;  %s1621_s2 = scalar_lea.vmem %s228_s12, 3456 }
  0x41   : > { %p1622_p9 = scmp.ne.s32.totalorder %s228_s12, %s1621_s2  ;;  %p1629_p1 = scmp.lt.s32.totalorder %s228_s12, %s228_s12 }
  0x42   : > { %p1377_p4 = pnand %p1376_p10, %p2363_p11  ;;  %p1630_p6 = scmp.lt.s32.totalorder %s1621_s2, %s1621_s2 }
  0x44   : > { %p1612_p7 = pneg %p1377_p4  ;;  %p1631_p2 = por %p1630_p6, %p1629_p1 }
  0x46   : > { %p1624_p12 = pnand %p1622_p9, %p1612_p7 }
  0x48   : > { %p1625_p5 = pneg %p1624_p12 }
  0x4a   : > { %p1632_p13 = pnand %p1631_p2, %p1625_p5 }
  0x4c   : > { %1635 = shalt.err (!%p1632_p13)
}
  0x4d   : > { %s1855_s21 = smov 64   ;;  %s1856_s10 = smov 4  }
  0x4e   : > { %s2386_s3 = sld [smem:[#allocation30_spill]]  ;;  %s1256_s14 = sadd.s32 4294967294, %s1849_s6  }
  0x4f   : > { %s55_s9 = sadd.s32 1, %s1829_s26  ;;  %p62_p1 = scmp.ne.s32.totalorder %s1829_s26, %s1825_s25 }
  0x50   : > { %p2387_p6 = scmp.eq.s32.totalorder %s1989_s28, 0  ;;  %p2389_p9 = scmp.eq.s32.totalorder %s1849_s6, 0 }
  0x51   : > { %p68_p0 = scmp.ne.s32.totalorder %s1825_s25, %s1821_s24  ;;  %p2390_p2 = scmp.eq.s32.totalorder %s2029_s7, 15 }
  0x52   : > { %s2062_s2 = scalar_select %p2387_p6, %s1829_s26, %s55_s9  }
  0x53   : > { %p64_p12 = por %p2389_p9, %p62_p1  ;;  %p2070_p10 = por %p2390_p2, %p62_p1 }
  0x54   : > { %1379 = dma.hbm_to_vmem [thread:$0]  (!%p1377_p4), %s2386_s3, 3456, %s228_s12, [#allocation10], %s1855_s21, %s1855_s21, %s1856_s10  }
  0x55   : > { %2388 = sst [smem:[#allocation26_spill]] %s2062_s2  ;;  %p208_p7 = scmp.eq.s32.totalorder %s1256_s14, 15 }
  0x56   : > { %p2076_p5 = por %p2363_p11, %p68_p0  ;;  %s244_s12 = sand.u32 1, %s1829_s26  }
  0x57   : > { %p2081_p4 = por %p208_p7, %p68_p0  ;;  %s1260_s28 = sshll.u32 %s244_s12, 6 }
  0x58   : > { %s2394_s0 = sld [smem:[#allocation27_spill]]  ;;  %p2395_p13 = scmp.lt.s32.totalorder %s1849_s6, 16 }
  0x59   : > { %s248_s14 = scalar_lea.vmem [#allocation3], %s1260_s28  ;;  %s245_s3 = scalar_lea.sflag [#allocation4], %s244_s12 }
  0x5a   : > { %p2091_p1 = pnand %p2395_p13, %p64_p12  ;;  %s260_s1 = sshll.u32 %s248_s14, 4  ;;  %s261_s1 = int_to_ptr.vmem [resolvable:$true] %s260_s1 }
  0x5b   : > { %s1649_s30 = scalar_lea.vmem %s261_s1, 1024  ;;  %s1857_s29 = smov [#allocation3]  }
  0x5c   : > { %p1638_p6 = pneg %p2091_p1  ;;  %p1650_p9 = scmp.ne.s32.totalorder %s261_s1, %s1649_s30 }
  0x5d   : > { %s1654_s2 = sshll.u32 %s1857_s29, 4  ;;  %s1655_s2 = int_to_ptr.vmem [resolvable:$false] %s1654_s2 }
  0x5e   : > { %s259_s13 = scalar_lea.hbm %s2394_s0, %s2003_s11  ;;  %p1652_p0 = pnand %p1650_p9, %p1638_p6 }
  0x5f   : > { %s1656_s10 = scalar_lea.vmem %s1655_s2, 2048  ;;  %p1657_p7 = scmp.lt.s32.totalorder %s261_s1, %s1655_s2 }
  0x60   : > { %p1653_p2 = pneg %p1652_p0  ;;  %p1658_p12 = scmp.lt.s32.totalorder %s1656_s10, %s1649_s30 }
  0x62   : > { %p1659_p13 = por %p1658_p12, %p1657_p7 }
  0x64   : > { %p1660_p11 = pnand %p1659_p13, %p1653_p2 }
  0x66   : > { %1663 = shalt.err (!%p1660_p11)
}
  0x67   : > { %s2397_s28 = smov 8   ;;  %s2398_s18 = smov 128  }
  0x68   : > { %s2399_s12 = sld [smem:[#allocation17_spill]]  ;;  %s119_s29 = sadd.s32 1, %s1805_s20 }
  0x69   : > { %1383 = dma.hbm_to_vmem [thread:$0]  (!%p2091_p1), %s259_s13, 1024, %s261_s1, %s245_s3, %s2398_s18, %s2398_s18, %s2397_s28  }
  0x6a   : > { %s2106_s30 = scalar_select %p1995_p8, %s1805_s20, %s119_s29  }
  0x6b   : > { %p126_p11 = scmp.ne.s32.totalorder %s1805_s20, %s1801_s19  ;;  %s299_s2 = sand.u32 1, %s1805_s20  }
  0x6c   : > { %s2400_s10 = sld [smem:[#allocation29_spill]]  ;;  %p2401_p9 = scmp.eq.s32.totalorder %s1849_s6, 0 }
  0x6d   : > { %p2402_p2 = scmp.eq.s32.totalorder %s2029_s7, 0  ;;  %s1266_s27 = sshll.u32 %s299_s2, 6 }
  0x6e   : > { %p132_p6 = scmp.ne.s32.totalorder %s1801_s19, %s2399_s12  ;;  %p128_p0 = por %p126_p11, %p2401_p9 }
  0x6f   : > { %p2404_p1 = scmp.lt.s32.totalorder %s1849_s6, 16  ;;  %s301_s4 = scalar_lea.vmem [#allocation8], %s1266_s27 }
  0x70   : > { %p2121_p7 = por %p132_p6, %p2402_p2  ;;  %s314_s13 = sshll.u32 %s301_s4, 4  ;;  %s315_s13 = int_to_ptr.vmem [resolvable:$true] %s314_s13 }
  0x71   : > { %p2127_p12 = pnand %p2404_p1, %p128_p0  ;;  %s1858_s12 = smov [#allocation8]  }
  0x72   : > { %s1154_s0 = scalar_lea.hbm %s2400_s10, %s2003_s11  ;;  %s1677_s11 = scalar_lea.vmem %s315_s13, 1024 }
  0x73   : > { %s1155_s1 = scalar_lea.hbm %s1154_s0, 2048  ;;  %p1666_p8 = pneg %p2127_p12 }
  0x74   : > { %p1678_p13 = scmp.ne.s32.totalorder %s315_s13, %s1677_s11  ;;  %s1682_s29 = sshll.u32 %s1858_s12, 4  ;;  %s1683_s29 = int_to_ptr.vmem [resolvable:$false] %s1682_s29 }
  0x75   : > { %s1684_s2 = scalar_lea.vmem %s1683_s29, 2048  ;;  %p1685_p9 = scmp.lt.s32.totalorder %s315_s13, %s1683_s29 }
  0x76   : > { %p1680_p11 = pnand %p1678_p13, %p1666_p8  ;;  %p1686_p2 = scmp.lt.s32.totalorder %s1684_s2, %s1677_s11 }
  0x78   : > { %p1681_p6 = pneg %p1680_p11  ;;  %p1687_p0 = por %p1686_p2, %p1685_p9 }
  0x7a   : > { %p1688_p1 = pnand %p1687_p0, %p1681_p6 }
  0x7c   : > { %1691 = shalt.err (!%p1688_p1)
}
  0x7d   : > { %1389 = dma.hbm_to_vmem [thread:$0]  (!%p2127_p12), %s1155_s1, 1024, %s315_s13, %s2018_s8, %s2398_s18, %s2398_s18, %s2397_s28  }
  0x7e   : > { %326 = sbr.rel (%p2044_p3) target bundleno = 442 (0x1ba), region = 40  ;;  %s2142_s0 = sand.u32 (!%p2044_p3), 1, %s1825_s25  }
  0x7f   : > { %s1270_s27 = sshll.u32 (!%p2044_p3), %s2142_s0, 6  ;;  %s329_s9 = scalar_lea.sflag (!%p2044_p3), [#allocation4], %s2142_s0 }
  0x80   : > { %s2148_s14 = scalar_lea.vmem (!%p2044_p3), [#allocation3], %s1270_s27 }
  0x83   : > { %1776 = dma.done.wait (%p2076_p5), %s329_s9, 1024  }
  0x84   : > { %1778 = vsyncadd (%p2076_p5), %s329_s9, 4294966272  ;;  %s337_s8 = sand.u32 1, %s2029_s7   ;;  %s339_s17 = sand.u32 1, %s1813_s22  }
  0x85   : > { %s1271_s28 = sshll.u32 %s339_s17, 6  ;;  %s338_s18 = scalar_lea.sflag [#allocation7], %s337_s8 }
  0x86   : > { %s2156_s10 = scalar_lea.vmem [#allocation6], %s1271_s28  ;;  %p2406_p3 = scmp.ne.s32.totalorder %s2384_s5, 0 }
  0x88   : > { %1780 = dma.done.wait (%p2406_p3), %s338_s18, 1024  }
  0x89   : > { %1782 = vsyncadd (%p2406_p3), %s338_s18, 4294966272  ;;  %s348_s1 = sand.u32 1, %s1801_s19  }
  0x8a   : > { %s1272_s3 = sshll.u32 %s348_s1, 6 }
  0x8b   : > { %s2163_s15 = scalar_lea.vmem [#allocation8], %s1272_s3 }
  0x8c   : > { %1784 = dma.done.wait (%p2121_p7), %s338_s18, 1024  }
  0x8d   : > { %1786 = vsyncadd (%p2121_p7), %s338_s18, 4294966272  ;;  %p2407_p5 = scmp.eq.s32.totalorder %s2029_s7, 0 }
  0x8f   : > { %1788 = dma.done.wait (%p2407_p5), [#allocation10], 3456   ;;  %p2408_p12 = pmov %p2407_p5 }
  0x90   : > { %v1859_v0 = vmov 0   ;;  %v1518_v1 = vld [vmem:[#allocation9 + $0x38] sm:$0xff]   ;;  %v1519_v2 = vld [vmem:[#allocation9 + $0x80] sm:$0xff]   ;;  %v1520_v3 = vld [vmem:[#allocation9 + $0x30] sm:$0xff]   ;;  %vm514_vm0 = vcmask 130048   ;;  %s2409_s5 = sld [smem:[#allocation31_spill]] }
  0x91   : > { %1790 = vsyncadd (%p2408_p12), [#allocation10], 4294963840  ;;  %527 = vmatprep.subr.bf16.mxu0 %v1859_v0  ;;  %737 = vmatprep.subr.bf16.mxu1 %v1859_v0  ;;  %v1521_v4 = vld [vmem:[#allocation9 + $0x78] sm:$0xff]   ;;  %v1522_v5 = vld [vmem:[#allocation9 + $0x28] sm:$0xff]   ;;  %s2410_s4 = sld [smem:[#allocation19_spill]]  ;;  %s2250_s11 = scalar_lea.vmem [#allocation11], %s1270_s27 }
  0x92   : > { %528 = vmatpush1.bf16.msra.mxu0 %v1518_v1  ;;  %738 = vmatpush1.bf16.msra.mxu1 %v1519_v2  ;;  %v1523_v6 = vld [vmem:[#allocation9 + $0x70] sm:$0xff]   ;;  %v1524_v7 = vld [vmem:[#allocation9 + $0x20] sm:$0xff]   ;;  %v1525_v8 = vld [vmem:[#allocation9 + $0x68] sm:$0xff]   ;;  %s2411_s13 = sld [smem:[#allocation20_spill]]  ;;  %s1093_s27 = sshll.u32 %s2250_s11, 4  ;;  %s2260_s27 = int_to_ptr.vmem [resolvable:$true] %s1093_s27 }
  0x93   : > { %529 = vmatprep.subr.bf16.mxu0 %v1859_v0  ;;  %739 = vmatprep.subr.bf16.mxu1 %v1859_v0  ;;  %v1526_v9 = vld [vmem:[#allocation9 + $0x18] sm:$0xff]   ;;  %v1527_v10 = vld [vmem:[#allocation9 + $0x60] sm:$0xff]   ;;  %v1528_v11 = vld [vmem:[#allocation9 + $0x10] sm:$0xff]   ;;  %s2412_s17 = sld [smem:[#allocation32_spill]]  ;;  %s1076_s18 = scalar_lea.sflag [#allocation5], %s2142_s0 }
  0x94   : > { %v1529_v12 = vld [vmem:[#allocation9 + $0x58] sm:$0xff]   ;;  %v1538_v13 = vld [vmem:[%s2148_s14 + $0x4] ss:$8 sps:$4 sm:$0xff]   ;;  %v1531_v16 = vld [vmem:[#allocation9 + $0x50] sm:$0xff]   ;;  %s1860_s1 = smov [#allocation11]  }
  0x95   : > { %v1541_v14 = vld [vmem:[%s2156_s10 + $0x4] ss:$8 sps:$4 sm:$0xff]   ;;  %1292 = vmatprep.mubr.msk.bf16.mxu0 %vm514_vm0, %v1538_v13  ;;  %v1536_v21 = vld [vmem:[%s2148_s14] ss:$8 sps:$4 sm:$0xff]   ;;  %v1544_v24 = vld [vmem:[%s2148_s14 + $0x14] ss:$8 sps:$4 sm:$0xff]  }
  0x96   : > { %530 = vmatpush1.bf16.msra.mxu0 %v1520_v3  ;;  %740 = vmatpush1.bf16.msra.mxu1 %v1521_v4  ;;  %v1530_v15 = vld [vmem:[#allocation9 + $0x8] sm:$0xff]   ;;  %v1532_v17 = vld [vmem:[#allocation9] sm:$0xff]   ;;  %v1546_v25 = vld [vmem:[%s2156_s10 + $0x14] ss:$8 sps:$4 sm:$0xff]   ;;  %s1697_s3 = sshll.u32 %s1860_s1, 4  ;;  %s1698_s3 = int_to_ptr.vmem [resolvable:$false] %s1697_s3 }
  0x97   : > { %531 = vmatprep.subr.bf16.mxu0 %v1859_v0  ;;  %741 = vmatprep.subr.bf16.mxu1 %v1859_v0  ;;  %v1533_v18 = vld [vmem:[#allocation9 + $0x48] sm:$0xff]   ;;  %v1534_v19 = vld [vmem:[#allocation9 + $0x40] sm:$0xff]   ;;  %v1548_v27 = vld [vmem:[%s2148_s14 + $0x10] ss:$8 sps:$4 sm:$0xff]   ;;  %s1340_s12 = sshll.u32 %s2410_s4, 3  ;;  %p1700_p11 = scmp.lt.s32.totalorder %s2260_s27, %s1698_s3 }
  0x98   : > { %1313 = vmatprep.mubr.msk.bf16.mxu1 %vm514_vm0, %v1541_v14  ;;  %v1535_v20 = vld [vmem:[#allocation9 + $0x88] sm:$0xff]   ;;  %v1543_v26 = vld [vmem:[#allocation9 + $0xc0] sm:$0xff]   ;;  %v1549_v28 = vld [vmem:[%s2156_s10 + $0x10] ss:$8 sps:$4 sm:$0xff]   ;;  %s1341_s29 = sshll.u32 %s2411_s13, 6 }
  0x99   : > { %v1539_v22 = vld [vmem:[%s2156_s10] ss:$8 sps:$4 sm:$0xff]   ;;  %v1550_v29 = vld [vmem:[#allocation9 + $0xb8] sm:$0xff]   ;;  %v1552_v30 = vld [vmem:[%s2148_s14 + $0x24] ss:$8 sps:$4 sm:$0xff]   ;;  %s1090_s2 = sadd.s32 %s1341_s29, %s1340_s12 }
  0x9a   : > { %532 = vmatpush1.bf16.msra.mxu0 %v1522_v5  ;;  %742 = vmatpush1.bf16.msra.mxu1 %v1523_v6  ;;  %v1542_v23 = vld [vmem:[#allocation9 + $0xc8] sm:$0xff]   ;;  %v1551_v32 = vld [vmem:[#allocation9 + $0xb0] sm:$0xff]   ;;  %v1559_v38 = vld [vmem:[#allocation9 + $0xa0] sm:$0xff]   ;;  %s1342_s9 = sshll.u32 %s1090_s2, 7 }
  0x9b   : > { %533 = vmatprep.subr.bf16.mxu0 %v1859_v0  ;;  %743 = vmatprep.subr.bf16.mxu1 %v1859_v0  ;;  %v1554_v31 = vld [vmem:[%s2156_s10 + $0x24] ss:$8 sps:$4 sm:$0xff]   ;;  %v1556_v33 = vld [vmem:[%s2148_s14 + $0x20] ss:$8 sps:$4 sm:$0xff]   ;;  %v1560_v36 = vld [vmem:[%s2148_s14 + $0x34] ss:$8 sps:$4 sm:$0xff]   ;;  %s2266_s28 = scalar_lea.hbm %s2412_s17, %s1342_s9 }
  0x9c   : > { %v1557_v34 = vld [vmem:[%s2156_s10 + $0x20] ss:$8 sps:$4 sm:$0xff]   ;;  %v1562_v37 = vld [vmem:[%s2156_s10 + $0x34] ss:$8 sps:$4 sm:$0xff]   ;;  %v1564_v39 = vld [vmem:[%s2148_s14 + $0x30] ss:$8 sps:$4 sm:$0xff]  }
  0x9d   : > { %v1558_v35 = vld [vmem:[#allocation9 + $0xa8] sm:$0xff]   ;;  %v1565_v40 = vld [vmem:[%s2156_s10 + $0x30] ss:$8 sps:$4 sm:$0xff]   ;;  %v1575_v48 = vld [vmem:[%s2163_s15 + $0x14] ss:$8 sps:$4 sm:$0xff]   ;;  %s1693_s10 = scalar_lea.vmem %s2260_s27, 1024 }
  0x9e   : > { %534 = vmatpush1.bf16.msra.mxu0 %v1524_v7  ;;  %744 = vmatpush1.bf16.msra.mxu1 %v1525_v8  ;;  %v1566_v41 = vld [vmem:[#allocation9 + $0x98] sm:$0xff]   ;;  %v1571_v42 = vld [vmem:[%s2163_s15 + $0x4] ss:$8 sps:$4 sm:$0xff]   ;;  %v1567_v44 = vld [vmem:[#allocation9 + $0x90] sm:$0xff]   ;;  %p1694_p7 = scmp.ne.s32.totalorder %s2260_s27, %s1693_s10 }
  0x9f   : > { %535 = vmatprep.subr.bf16.mxu0 %v1859_v0  ;;  %745 = vmatprep.subr.bf16.mxu1 %v1859_v0  ;;  %v1574_v43 = vld [vmem:[%s2163_s15 + $0x24] ss:$8 sps:$4 sm:$0xff]   ;;  %v1568_v45 = vld [vmem:[#allocation9 + $0xd0] sm:$0xff]   ;;  %v1569_v46 = vld [vmem:[%s2163_s15] ss:$8 sps:$4 sm:$0xff]  }
  0xa0   : > { %v1572_v47 = vld [vmem:[%s2163_s15 + $0x20] ss:$8 sps:$4 sm:$0xff]   ;;  %v1577_v49 = vld [vmem:[%s2163_s15 + $0x34] ss:$8 sps:$4 sm:$0xff]   ;;  %v1579_v50 = vld [vmem:[%s2163_s15 + $0x10] ss:$8 sps:$4 sm:$0xff]   ;;  %p1695_p8 = pnand %p1694_p7, %p2070_p10 }
  0xa1   : > { %v1580_v51 = vld [vmem:[%s2163_s15 + $0x30] ss:$8 sps:$4 sm:$0xff]   ;;  %s1699_s15 = scalar_lea.vmem %s1698_s3, 2048 }
  0xa2   : > { %536 = vmatpush1.bf16.msra.mxu0 %v1526_v9  ;;  %746 = vmatpush1.bf16.msra.mxu1 %v1527_v10  ;;  %p1696_p13 = pneg %p1695_p8  ;;  %p1701_p6 = scmp.lt.s32.totalorder %s1699_s15, %s1693_s10 }
  0xa3   : > { %537 = vmatprep.subr.bf16.mxu0 %v1859_v0  ;;  %747 = vmatprep.subr.bf16.mxu1 %v1859_v0 }
  0xa4   : > { %p1702_p9 = por %p1701_p6, %p1700_p11 }
  0xa6   : > { %538 = vmatpush1.bf16.msra.mxu0 %v1528_v11  ;;  %748 = vmatpush1.bf16.msra.mxu1 %v1529_v12  ;;  %p1703_p2 = pnand %p1702_p9, %p1696_p13 }
  0xa7   : > { %539 = vmatprep.subr.bf16.mxu0 %v1859_v0  ;;  %749 = vmatprep.subr.bf16.mxu1 %v1859_v0 }
  0xaa   : > { %540 = vmatpush1.bf16.msra.mxu0 %v1530_v15  ;;  %750 = vmatpush1.bf16.msra.mxu1 %v1531_v16 }
  0xab   : > { %541 = vmatprep.subr.bf16.mxu0 %v1859_v0  ;;  %751 = vmatprep.subr.bf16.mxu1 %v1859_v0 }
  0xae   : > { %542 = vmatpush1.bf16.msra.mxu0 %v1532_v17  ;;  %752 = vmatpush1.bf16.msra.mxu1 %v1533_v18 }
  0xaf   : > { %557 = vmatprep.subr.bf16.mxu0 %v1859_v0  ;;  %767 = vmatprep.subr.bf16.mxu1 %v1859_v0 }
  0xb2   : > { %558 = vmatpush2.bf16.msra.mxu0 %v1534_v19  ;;  %768 = vmatpush2.bf16.msra.mxu1 %v1535_v20 }
  0xb3   : > { %955 = vmatprep.subr.bf16.mxu0 %v1859_v0  ;;  %1345 = vmatprep.subr.bf16.mxu1 %v1859_v0 }
  0xb5   : > { %560 = vmatmul.mubr.bf16.vlgmr.msra.gmra.mxu0 %v1536_v21  ;;  %770 = vmatmul.mubr.bf16.vlgmr.msra.gmra.mxu1 %v1539_v22 }
  0xb6   : > { %956 = vmatpush1.bf16.msra.mxu0 %v1542_v23  ;;  %1354 = vmatpush1.bf16.msra.mxu1 %v1542_v23  ;;  %v1338_v23 = vld [vmem:[%s2409_s5] ss:$0 sm:$0xff] }
  0xb7   : > { %957 = vmatprep.subr.bf16.mxu0 %v1859_v0  ;;  %1346 = vmatprep.subr.bf16.mxu1 %v1859_v0 }
  0xb8   : > { %1293 = vmatprep.mubr.msk.bf16.mxu0 %vm514_vm0, %v1544_v24  ;;  %1314 = vmatprep.mubr.msk.bf16.mxu1 %vm514_vm0, %v1546_v25 }
  0xba   : > { %958 = vmatpush1.bf16.msra.mxu0 %v1543_v26  ;;  %1355 = vmatpush1.bf16.msra.mxu1 %v1543_v26 }
  0xbb   : > { %959 = vmatprep.subr.bf16.mxu0 %v1859_v0  ;;  %1347 = vmatprep.subr.bf16.mxu1 %v1859_v0 }
  0xbd   : > { %568 = vmatmul.mubr.bf16.gmra.mxu0 %v1548_v27  ;;  %778 = vmatmul.mubr.bf16.gmra.mxu1 %v1549_v28 }
  0xbe   : > { %960 = vmatpush1.bf16.msra.mxu0 %v1550_v29  ;;  %1356 = vmatpush1.bf16.msra.mxu1 %v1550_v29 }
  0xbf   : > { %961 = vmatprep.subr.bf16.mxu0 %v1859_v0  ;;  %1348 = vmatprep.subr.bf16.mxu1 %v1859_v0 }
  0xc0   : > { %1294 = vmatprep.mubr.msk.bf16.mxu0 %vm514_vm0, %v1552_v30  ;;  %1315 = vmatprep.mubr.msk.bf16.mxu1 %vm514_vm0, %v1554_v31 }
  0xc2   : > { %962 = vmatpush1.bf16.msra.mxu0 %v1551_v32  ;;  %1357 = vmatpush1.bf16.msra.mxu1 %v1551_v32 }
  0xc3   : > { %963 = vmatprep.subr.bf16.mxu0 %v1859_v0  ;;  %1349 = vmatprep.subr.bf16.mxu1 %v1859_v0 }
  0xc5   : > { %576 = vmatmul.mubr.bf16.gmra.mxu0 %v1556_v33  ;;  %786 = vmatmul.mubr.bf16.gmra.mxu1 %v1557_v34 }
  0xc6   : > { %964 = vmatpush1.bf16.msra.mxu0 %v1558_v35  ;;  %1358 = vmatpush1.bf16.msra.mxu1 %v1558_v35 }
  0xc7   : > { %965 = vmatprep.subr.bf16.mxu0 %v1859_v0  ;;  %1350 = vmatprep.subr.bf16.mxu1 %v1859_v0 }
  0xc8   : > { %1295 = vmatprep.mubr.msk.bf16.mxu0 %vm514_vm0, %v1560_v36  ;;  %1316 = vmatprep.mubr.msk.bf16.mxu1 %vm514_vm0, %v1562_v37 }
  0xca   : > { %966 = vmatpush1.bf16.msra.mxu0 %v1559_v38  ;;  %1359 = vmatpush1.bf16.msra.mxu1 %v1559_v38 }
  0xcb   : > { %967 = vmatprep.subr.bf16.mxu0 %v1859_v0  ;;  %1351 = vmatprep.subr.bf16.mxu1 %v1859_v0 }
  0xcd   : > { %584 = vmatmul.mubr.bf16.gmra.mxu0 %v1564_v39  ;;  %794 = vmatmul.mubr.bf16.gmra.mxu1 %v1565_v40 }
  0xce   : > { %968 = vmatpush1.bf16.msra.mxu0 %v1566_v41  ;;  %1360 = vmatpush1.bf16.msra.mxu1 %v1566_v41 }
  0xcf   : > { %969 = vmatprep.subr.bf16.mxu0 %v1859_v0  ;;  %1352 = vmatprep.subr.bf16.mxu1 %v1859_v0 }
  0xd0   : > { %1334 = vmatprep.mubr.msk.bf16.mxu0 %vm514_vm0, %v1571_v42  ;;  %1336 = vmatprep.mubr.msk.bf16.mxu1 %vm514_vm0, %v1574_v43 }
  0xd2   : > { %970 = vmatpush1.bf16.msra.mxu0 %v1567_v44  ;;  %1361 = vmatpush1.bf16.msra.mxu1 %v1567_v44 }
  0xd3   : > { %985 = vmatprep.subr.bf16.mxu0 %v1859_v0  ;;  %1353 = vmatprep.subr.bf16.mxu1 %v1859_v0 }
  0xd6   : > { %986 = vmatpush2.bf16.msra.mxu0 %v1568_v45  ;;  %1362 = vmatpush2.bf16.msra.mxu1 %v1568_v45 }
  0xd9   : > { %988 = vmatmul.mubr.bf16.vlgmr.msra.gmra.mxu0 %v1569_v46  ;;  %1004 = vmatmul.mubr.bf16.vlgmr.msra.gmra.mxu1 %v1572_v47 }
  0xda   : > { %1335 = vmatprep.mubr.msk.bf16.mxu0 %vm514_vm0, %v1575_v48  ;;  %1337 = vmatprep.mubr.msk.bf16.mxu1 %vm514_vm0, %v1577_v49 }
  0xe1   : > { %996 = vmatmul.mubr.bf16.gmra.mxu0 %v1579_v50  ;;  %1012 = vmatmul.mubr.bf16.gmra.mxu1 %v1580_v51 }
 0x175   : > { %v561_v52 = vpop.f32.mrf.mxu0  ;;  %v771_v53 = vpop.f32.mrf.mxu1 }
 0x176   : > { %v802_v20 = vadd.f32 %v771_v53, %v561_v52 }
 0x177   : > { %v563_v54 = vpop.f32.mrf.mxu0  ;;  %v773_v55 = vpop.f32.mrf.mxu1 }
 0x179   : > { %v564_v56 = vpop.f32.mrf.mxu0  ;;  %v774_v57 = vpop.f32.mrf.mxu1 }
 0x17a   : > { %v803_v28 = vadd.f32 %v774_v57, %v564_v56 }
 0x17b   : > { %v566_v58 = vpop.f32.mrf.mxu0  ;;  %v776_v59 = vpop.f32.mrf.mxu1 }
 0x17d   : > { %v569_v60 = vpop.f32.mrf.mxu0  ;;  %v779_v61 = vpop.f32.mrf.mxu1 }
 0x17e   : > { %v804_v40 = vadd.f32 %v779_v61, %v569_v60 }
 0x17f   : > { %v571_v62 = vpop.f32.mrf.mxu0  ;;  %v781_v63 = vpop.f32.mrf.mxu1 }
 0x181   : > { %v572_v0 = vpop.f32.mrf.mxu0  ;;  %v782_v1 = vpop.f32.mrf.mxu1 }
 0x182   : > { %v805_v52 = vadd.f32 %v782_v1, %v572_v0 }
 0x183   : > { %v574_v2 = vpop.f32.mrf.mxu0  ;;  %v784_v3 = vpop.f32.mrf.mxu1 }
 0x185   : > { %v577_v4 = vpop.f32.mrf.mxu0  ;;  %v787_v5 = vpop.f32.mrf.mxu1 }
 0x186   : > { %v806_v21 = vadd.f32 %v787_v5, %v577_v4 }
 0x187   : > { %v579_v6 = vpop.f32.mrf.mxu0  ;;  %v789_v7 = vpop.f32.mrf.mxu1 }
 0x189   : > { %v580_v8 = vpop.f32.mrf.mxu0  ;;  %v790_v9 = vpop.f32.mrf.mxu1 }
 0x18a   : > { %v807_v31 = vadd.f32 %v790_v9, %v580_v8 }
 0x18b   : > { %v582_v10 = vpop.f32.mrf.mxu0  ;;  %v792_v11 = vpop.f32.mrf.mxu1 }
 0x18d   : > { %v585_v12 = vpop.f32.mrf.mxu0  ;;  %v795_v13 = vpop.f32.mrf.mxu1 }
 0x18e   : > { %v808_v43 = vadd.f32 %v795_v13, %v585_v12 }
 0x18f   : > { %v587_v14 = vpop.f32.mrf.mxu0  ;;  %v797_v15 = vpop.f32.mrf.mxu1 }
 0x191   : > { %v588_v16 = vpop.f32.mrf.mxu0  ;;  %v798_v17 = vpop.f32.mrf.mxu1 }
 0x192   : > { %v809_v55 = vadd.f32 %v798_v17, %v588_v16 }
 0x193   : > { %v590_v18 = vpop.f32.mrf.mxu0  ;;  %v800_v19 = vpop.f32.mrf.mxu1 }
 0x199   : > { %v989_v22 = vpop.f32.mrf.mxu0  ;;  %v1005_v25 = vpop.f32.mrf.mxu1 }
 0x19a   : > { %v1020_v24 = vadd.f32 %v989_v22, %v802_v20  ;;  %v1024_v26 = vadd.f32 %v1005_v25, %v806_v21 }
 0x19b   : > { %v991_v27 = vpop.f32.mrf.mxu0  ;;  %v1007_v30 = vpop.f32.mrf.mxu1 }
 0x19c   : > { %v1051_v29 = vadd.f32 %v1338_v23, %v1020_v24  ;;  %v1055_v32 = vadd.f32 %v1338_v23, %v1024_v26 }
 0x19d   : > { %v992_v33 = vpop.f32.mrf.mxu0  ;;  %v1008_v36 = vpop.f32.mrf.mxu1 }
 0x19e   : > { %v1059_v34 = vmax.f32 %v1051_v29, 0.0  ;;  %v1021_v35 = vadd.f32 %v992_v33, %v803_v28  ;;  %v1063_v37 = vmax.f32 %v1055_v32, 0.0  ;;  %v1025_v38 = vadd.f32 %v1008_v36, %v807_v31 }
 0x19f   : > { %v994_v39 = vpop.f32.mrf.mxu0  ;;  %v1010_v42 = vpop.f32.mrf.mxu1 }
 0x1a0   : > { %1067 = vst [vmem:[%s2250_s11] sm:$0xff] %v1059_v34  ;;  %v1052_v41 = vadd.f32 %v1338_v23, %v1021_v35  ;;  %1071 = vst [vmem:[%s2250_s11 + $0x20] sm:$0xff] %v1063_v37  ;;  %v1056_v44 = vadd.f32 %v1338_v23, %v1025_v38 }
 0x1a1   : > { %v997_v45 = vpop.f32.mrf.mxu0  ;;  %v1013_v48 = vpop.f32.mrf.mxu1 }
 0x1a2   : > { %v1060_v46 = vmax.f32 %v1052_v41, 0.0  ;;  %v1022_v47 = vadd.f32 %v997_v45, %v804_v40  ;;  %v1064_v49 = vmax.f32 %v1056_v44, 0.0  ;;  %v1026_v50 = vadd.f32 %v1013_v48, %v808_v43 }
 0x1a3   : > { %v999_v51 = vpop.f32.mrf.mxu0  ;;  %v1015_v54 = vpop.f32.mrf.mxu1 }
 0x1a4   : > { %1068 = vst [vmem:[%s2250_s11 + $0x8] sm:$0xff] %v1060_v46  ;;  %v1053_v53 = vadd.f32 %v1338_v23, %v1022_v47  ;;  %1072 = vst [vmem:[%s2250_s11 + $0x28] sm:$0xff] %v1064_v49  ;;  %v1057_v56 = vadd.f32 %v1338_v23, %v1026_v50 }
 0x1a5   : > { %v1000_v57 = vpop.f32.mrf.mxu0  ;;  %v1016_v60 = vpop.f32.mrf.mxu1 }
 0x1a6   : > { %v1061_v58 = vmax.f32 %v1053_v53, 0.0  ;;  %v1023_v59 = vadd.f32 %v1000_v57, %v805_v52  ;;  %v1065_v61 = vmax.f32 %v1057_v56, 0.0  ;;  %v1027_v62 = vadd.f32 %v1016_v60, %v809_v55 }
 0x1a7   : > { %v1002_v63 = vpop.f32.mrf.mxu0  ;;  %v1018_v1 = vpop.f32.mrf.mxu1 }
 0x1a8   : > { %1069 = vst [vmem:[%s2250_s11 + $0x10] sm:$0xff] %v1061_v58  ;;  %v1054_v0 = vadd.f32 %v1338_v23, %v1023_v59  ;;  %1073 = vst [vmem:[%s2250_s11 + $0x30] sm:$0xff] %v1065_v61  ;;  %v1058_v2 = vadd.f32 %v1338_v23, %v1027_v62 }
 0x1aa   : > { %v1062_v3 = vmax.f32 %v1054_v0, 0.0  ;;  %v1066_v4 = vmax.f32 %v1058_v2, 0.0 }
 0x1ac   : > { %1070 = vst [vmem:[%s2250_s11 + $0x18] sm:$0xff] %v1062_v3  ;;  %1074 = vst [vmem:[%s2250_s11 + $0x38] sm:$0xff] %v1066_v4 }
 0x1ad   : > { %1706 = shalt.err (!%p1703_p2)
}
 0x1ae   : > { %s1707_s26 = scalar_lea.hbm %s2266_s28, 1024  ;;  %s1711_s4 = scalar_lea.hbm %s2412_s17, 16384 }
 0x1af   : > { %p1708_p0 = scmp.ne.s32.totalorder %s2266_s28, %s1707_s26  ;;  %p1712_p5 = scmp.lt.s32.totalorder %s2266_s28, %s2412_s17 }
 0x1b0   : > { %p1713_p12 = scmp.lt.s32.totalorder %s1711_s4, %s1707_s26 }
 0x1b1   : > { %p1709_p1 = pnand %p1708_p0, %p2070_p10 }
 0x1b2   : > { %p1714_p7 = por %p1713_p12, %p1712_p5 }
 0x1b3   : > { %p1710_p3 = pneg %p1709_p1 }
 0x1b5   : > { %p1715_p8 = pnand %p1714_p7, %p1710_p3 }
 0x1b7   : > { %1718 = shalt.err (!%p1715_p8)
}
 0x1b8   : > { %s1861_s12 = smov 128   ;;  %s1862_s29 = smov 8  }
 0x1b9   : > { %1374 = dma.vmem_to_hbm [thread:$0]  (%p2070_p10), %s2260_s27, 1024, %s2266_s28, %s1076_s18, %s1861_s12, %s1861_s12, %s1862_s29  }
 0x1ba PF: > { %p1397_p13 = scmp.ge.s32.totalorder %s1849_s6, 2  ;;  %s1108_s2 = sand.u32 1, %s1821_s24  }
 0x1bb   : > { %s1109_s9 = scalar_lea.sflag [#allocation5], %s1108_s2 }
 0x1bc   : > { %p1391_p11 = pnand %p1397_p13, %p2081_p4 }
 0x1be   : > { %p1392_p6 = pneg %p1391_p11 }
 0x1c0   : > { %1792 = dma.done.wait (%p1392_p6), %s1109_s9, 1024  }
 0x1c1   : > { %1794 = vsyncadd (%p1392_p6), %s1109_s9, 4294966272  ;;  %s25_s6 = sadd.s32 1, %s1849_s6   ;;  %s2414_s16 = sld [smem:[#allocation25_spill]] }
 0x1c2   : > { %p2298_p9 = scmp.ge.s32.totalorder %s25_s6, 18   ;;  %s2415_s0 = sld [smem:[#allocation18_spill]] }
 0x1c3   : > { %s2416_s26 = sld [smem:[#allocation26_spill]]  ;;  %s2421_s18 = smov %s1801_s19 }
 0x1c4   : > { %s2417_s27 = sld [smem:[#allocation21_spill]]  ;;  %s2422_s19 = smov %s1805_s20 }
 0x1c5   : > { %s2418_s28 = sld [smem:[#allocation22_spill]]  ;;  %s2423_s20 = smov %s2106_s30 }
 0x1c6   : > { %s2419_s29 = sld [smem:[#allocation23_spill]]  ;;  %s2424_s21 = smov %s1813_s22 }
 0x1c7   : > { %s2420_s8 = sld [smem:[#allocation24_spill]]  ;;  %s2425_s22 = smov %s1817_s23 }
 0x1c8   : > { %s2426_s23 = smov %s2414_s16  ;;  %s2427_s24 = smov %s1825_s25 }
 0x1c9   : > { %s2428_s25 = smov %s2415_s0  ;;  %24 = sbr.rel (!%p2298_p9) target bundleno = 20 (0x14), region = 115 }
 0x1cd   : > { %s2429_s30 = smov %s2420_s8 }
 0x1ce   :  { %1114 = vsyncpa [#allocation4], 1 }
 0x1cf   :  { %1116 = vsyncpa [#allocation4 + $0x1], 1 }
 0x1d0   :  { %1117 = vsyncpa [#allocation7], 1 }
 0x1d1   :  { %1119 = vsyncpa [#allocation7 + $0x1], 1 }
 0x1d2   :  { %1120 = vsyncpa [#allocation10], 1 }
 0x1d3   :  { %1121 = vsyncpa [#allocation5], 1 }
 0x1d4   :  { %1123 = vsyncpa [#allocation5 + $0x1], 1 }

</bundles_post_ra>
